<compile_context>
chip_gen: v7x
topology: tpu7x:2x2x1
jax: 0.10.0
libtpu: 0.0.40
codegen_flags: <defaults>
</compile_context>

<pallas_src>
import functools

import jax
import jax.numpy as jnp
import numpy as np
from jax.experimental import pallas as pl
from jax.experimental.pallas import tpu as pltpu

# Rows (of 128 lanes) per reduction tile in the large-sample (R-tiled) path.
# 8192 * 128 * 4B = 4 MiB f32 per input per pipeline buffer -> ~16 MiB of double-
# buffered inputs; the streaming chunk loop keeps in-kernel temporaries < ~2 MiB.
_MAX_ROWS = 8192
# Rows per block in the batch-blocked (small-sample) path; this path materializes the
# full f32 casts, so keep its block a bit smaller (2 MiB f32 per input per buffer).
_BATCH_PATH_ROWS = 4096
# Streaming chunk inside the R-tiled kernel (512 KiB f32 per chunk temporary).
_CHUNK_ROWS = 1024
# Explicit scoped-VMEM limit: fits v7x's 64 MiB physical VMEM with headroom, and lifts
# the 16 MiB (v5e) / 32 MiB (v6e) defaults so the 8192-row tiles fit everywhere.
_VMEM_LIMIT_BYTES = 40 * 1024 * 1024


def _round_up(x, m):
    return (x + m - 1) // m * m


def _iou_rtiled_kernel(p_ref, t_ref, out_ref, acc_ref, *, rows_total, r_tile, chunk):
    """Large-sample path.  Grid = (batch, r_tiles); block = (1, r_tile, 128).

    Streams the tile in `chunk`-row slices, folding sum(p), sum(t), sum(p*t) into
    three (8,128) f32 vreg partials; the expensive cross-lane reduce happens only on
    the last R step.  Tail rows are masked only on the last tile.
    """
    r = pl.program_id(1)
    nr = pl.num_programs(1)
    n_chunks = r_tile // chunk
    folds = chunk // 8

    @pl.when(r == 0)
    def _init():
        acc_ref[...] = jnp.zeros_like(acc_ref)

    def accumulate(masked):
        if masked:
            # Hoisted once per (last) tile; only the +row0 / compare / selects are
            # per-chunk.  Use select (not multiply): out-of-bounds rows of a partial
            # block are unspecified and may contain NaN/Inf.
            base_rows = (
                jax.lax.broadcasted_iota(jnp.int32, (chunk, 128), 0) + r * r_tile
            )

        def body(c, carry):
            ap, at, apt = carry
            row0 = pl.multiple_of(c * chunk, chunk)
            p = p_ref[0, pl.ds(row0, chunk), :].astype(jnp.float32)
            t = t_ref[0, pl.ds(row0, chunk), :].astype(jnp.float32)
            if masked:
                keep = (base_rows + row0) < rows_total
                p = jnp.where(keep, p, 0.0)
                t = jnp.where(keep, t, 0.0)
            # Pure vreg adds; the cross-lane/sublane reduce is deferred to finalize.
            ap = ap + jnp.sum(p.reshape(folds, 8, 128), axis=0)
            at = at + jnp.sum(t.reshape(folds, 8, 128), axis=0)
            apt = apt + jnp.sum((p * t).reshape(folds, 8, 128), axis=0)
            return ap, at, apt

        zero = jnp.zeros((8, 128), jnp.float32)
        ap, at, apt = jax.lax.fori_loop(
            0, n_chunks, body, (zero, zero, zero), unroll=True
        )
        acc_ref[0] += ap
        acc_ref[1] += at
        acc_ref[2] += apt

    if rows_total % r_tile == 0:
        # Every tile is full: no masking anywhere.
        accumulate(False)
    else:
        @pl.when(r < nr - 1)
        def _full_tiles():
            accumulate(False)

        @pl.when(r == nr - 1)
        def _tail_tile():
            accumulate(True)

    @pl.when(r == nr - 1)
    def _finalize():
        sum_p = jnp.sum(acc_ref[0])
        sum_t = jnp.sum(acc_ref[1])
        inter = jnp.sum(acc_ref[2])
        union = sum_p + sum_t - inter
        out_ref[0, 0] = jnp.float32(1.0) - inter / union


def _iou_batched_kernel(p_ref, t_ref, out_ref):
    """Small-sample path.  Grid = (batch_blocks,); block = (b_tile, R, 128).

    Whole samples fit in one block, so do the per-sample reduction directly and emit
    a lane-dense (b_tile, 128) output (loss broadcast across lanes; lane 0 is used).
    Partial batch-edge blocks produce garbage rows that the wrapper discards.
    """
    p = p_ref[...].astype(jnp.float32)  # (b_tile, R, 128)
    t = t_ref[...].astype(jnp.float32)
    inter = jnp.sum(jnp.sum(p * t, axis=1), axis=-1, keepdims=True)  # (b_tile, 1)
    sum_p = jnp.sum(jnp.sum(p, axis=1), axis=-1, keepdims=True)
    sum_t = jnp.sum(jnp.sum(t, axis=1), axis=-1, keepdims=True)
    union = sum_p + sum_t - inter
    loss = jnp.float32(1.0) - inter / union  # (b_tile, 1)
    out_ref[...] = jnp.broadcast_to(loss, out_ref.shape)


@functools.partial(jax.jit, static_argnames=("max_rows",))
def iou_loss(pred, target, max_rows=_MAX_ROWS):
    assert pred.shape == target.shape
    assert max_rows >= 8 and max_rows % 8 == 0
    if max_rows > _CHUNK_ROWS:
        assert max_rows % _CHUNK_ROWS == 0

    B = pred.shape[0]
    n = int(np.prod(pred.shape[1:]))
    itemsize = jnp.dtype(pred.dtype).itemsize

    # Flatten per-sample in the NATIVE dtype (no f32 upcast in the wrapper).
    p = pred.reshape(B, -1)
    t = target.reshape(B, -1)

    n128 = _round_up(n, 128)
    if n128 != n:
        # Rare lane-unaligned case: pad to a multiple of 128 (zeros don't change sums).
        p = jnp.pad(p, ((0, 0), (0, n128 - n)))
        t = jnp.pad(t, ((0, 0), (0, n128 - n)))
    R = n128 // 128
    p = p.reshape(B, R, 128)
    t = t.reshape(B, R, 128)

    cost = pl.CostEstimate(
        flops=int(5 * B * n),
        transcendentals=0,
        bytes_accessed=int(2 * B * n * itemsize + 4 * B),
    )

    batch_rows = min(max_rows, _BATCH_PATH_ROWS)
    use_batch_path = R <= batch_rows and (
        B * R <= batch_rows or batch_rows // R >= 8
    )

    if use_batch_path:
        # ---- Small/medium samples: many samples per grid step. ----
        if B * R <= batch_rows:
            b_tile = B          # single grid step; block dims == full array dims.
        else:
            b_tile = (batch_rows // R) // 8 * 8  # >= 8, multiple of 8 (layout rule).
        grid_b = pl.cdiv(B, b_tile)
        b_pad = grid_b * b_tile

        out = pl.pallas_call(
            _iou_batched_kernel,
            out_shape=jax.ShapeDtypeStruct((b_pad, 128), jnp.float32),
            grid=(grid_b,),
            in_specs=[
                pl.BlockSpec((b_tile, R, 128), lambda b: (b, 0, 0)),
                pl.BlockSpec((b_tile, R, 128), lambda b: (b, 0, 0)),
            ],
            out_specs=pl.BlockSpec((b_tile, 128), lambda b: (b, 0)),
            compiler_params=pltpu.CompilerParams(
                dimension_semantics=("parallel",),
                vmem_limit_bytes=_VMEM_LIMIT_BYTES,
            ),
            cost_estimate=cost,
        )(p, t)
        per_sample = out[:B, 0]
    else:
        # ---- Large samples: tile the per-sample reduction along R. ----
        r_tile = min(max_rows, _round_up(R, _CHUNK_ROWS))
        chunk = min(_CHUNK_ROWS, r_tile)
        assert r_tile % chunk == 0 and chunk % 8 == 0
        grid_r = pl.cdiv(R, r_tile)

        kernel = functools.partial(
            _iou_rtiled_kernel, rows_total=R, r_tile=r_tile, chunk=chunk
        )
        out = pl.pallas_call(
            kernel,
            out_shape=jax.ShapeDtypeStruct((B, 1), jnp.float32),
            grid=(B, grid_r),
            in_specs=[
                pl.BlockSpec((1, r_tile, 128), lambda b, r: (b, r, 0)),
                pl.BlockSpec((1, r_tile, 128), lambda b, r: (b, r, 0)),
            ],
            out_specs=pl.BlockSpec(
                (1, 1), lambda b, r: (b, 0), memory_space=pltpu.MemorySpace.SMEM
            ),
            scratch_shapes=[pltpu.VMEM((3, 8, 128), jnp.float32)],
            compiler_params=pltpu.CompilerParams(
                # Independent per-sample outputs -> batch axis is truly parallel
                # (megacore-shardable); R is the carried reduction axis.
                dimension_semantics=("parallel", "arbitrary"),
                vmem_limit_bytes=_VMEM_LIMIT_BYTES,
            ),
            cost_estimate=cost,
        )(p, t)
        per_sample = out[:, 0]

    # Mean of (1 - IoU_i) over the batch == sum(1 - IoU_i) / B (PyTorch reference).
    return jnp.mean(per_sample)


def _iou_reference(pred, target):
    # Pure-JAX reference matching the PyTorch loop exactly (f32 accumulation).
    pred = pred.astype(jnp.float32)
    target = target.astype(jnp.float32)
    b = pred.shape[0]
    total = 0.0
    for i in range(b):
        inter = jnp.sum(target[i] * pred[i])
        union = jnp.sum(target[i]) + jnp.sum(pred[i]) - inter
        total = total + (1.0 - inter / union)
    return total / b


def _check(loss, ref, rtol, atol, tag):
    assert np.allclose(np.asarray(loss), np.asarray(ref), rtol=rtol, atol=atol), (
        tag, loss, ref)


if __name__ == "__main__":
    key = jax.random.PRNGKey(0)
    k1, k2, k3, k4, k5, k6 = jax.random.split(key, 6)

    # 1) f32, lane-aligned sample (C*H*W = 1024 -> R = 8): batch-blocked path, 1 step.
    pred = jax.nn.sigmoid(jax.random.normal(k1, (2, 4, 16, 16), dtype=jnp.float32))
    target = jax.nn.sigmoid(jax.random.normal(k2, (2, 4, 16, 16), dtype=jnp.float32))
    loss = jax.block_until_ready(iou_loss(pred, target))
    _check(loss, _iou_reference(pred, target), 1e-5, 1e-6, "f32-batched")

    # 2) bf16 inputs DMA'd natively; accumulation stays f32 inside the kernel.
    loss_bf16 = jax.block_until_ready(
        iou_loss(pred.astype(jnp.bfloat16), target.astype(jnp.bfloat16))
    )
    ref_bf16 = _iou_reference(pred.astype(jnp.bfloat16), target.astype(jnp.bfloat16))
    _check(loss_bf16, ref_bf16, 1e-3, 1e-3, "bf16-batched")

    # 3) R-tiled path, multi-tile, masked partial last tile (R=20, r_tile=8, grid_r=3).
    p3 = jax.nn.sigmoid(jax.random.normal(k3, (2, 10, 16, 16), dtype=jnp.float32))
    t3 = jax.nn.sigmoid(jax.random.normal(k4, (2, 10, 16, 16), dtype=jnp.float32))
    loss3 = jax.block_until_ready(iou_loss(p3, t3, max_rows=8))
    _check(loss3, _iou_reference(p3, t3), 1e-5, 1e-6, "rtiled-masked")

    # 4) R-tiled path, multi-tile, no masking needed (R=16, r_tile=8, grid_r=2).
    p4 = jax.nn.sigmoid(jax.random.normal(k5, (2, 8, 16, 16), dtype=jnp.float32))
    t4 = jax.nn.sigmoid(jax.random.normal(k6, (2, 8, 16, 16), dtype=jnp.float32))
    loss4 = jax.block_until_ready(iou_loss(p4, t4, max_rows=8))
    _check(loss4, _iou_reference(p4, t4), 1e-5, 1e-6, "rtiled-unmasked")

    # 5) Batch-blocked path with multiple batch blocks and a partial batch edge
    #    (B=10, R=4, b_tile=8, grid_b=2; padded batch rows are discarded).
    k7, k8 = jax.random.split(k3)
    p5 = jax.nn.sigmoid(jax.random.normal(k7, (10, 2, 16, 16), dtype=jnp.float32))
    t5 = jax.nn.sigmoid(jax.random.normal(k8, (10, 2, 16, 16), dtype=jnp.float32))
    loss5 = jax.block_until_ready(iou_loss(p5, t5, max_rows=32))
    _check(loss5, _iou_reference(p5, t5), 1e-5, 1e-6, "batched-grid")

    # 6) Lane-unaligned sample size (pad-to-128 fallback), batch-blocked path.
    k9, k10 = jax.random.split(k4)
    p6 = jax.nn.sigmoid(jax.random.normal(k9, (2, 3, 10, 10), dtype=jnp.float32))
    t6 = jax.nn.sigmoid(jax.random.normal(k10, (2, 3, 10, 10), dtype=jnp.float32))
    loss6 = jax.block_until_ready(iou_loss(p6, t6))
    _check(loss6, _iou_reference(p6, t6), 1e-5, 1e-6, "unaligned")

    print("KERNEL_OK")
</pallas_src>

<mosaic_0001>
module attributes {stable_mosaic.version = 11 : i64} {
  func.func @_iou_batched_kernel(%arg0: i32, %arg1: memref<2x8x128xf32, #tpu.memory_space<vmem>>, %arg2: memref<2x8x128xf32, #tpu.memory_space<vmem>>, %arg3: memref<2x128xf32, #tpu.memory_space<vmem>>) attributes {dimension_semantics = [#tpu.dimension_semantics<parallel>], iteration_bounds = array<i64: 1>, scalar_prefetch = 0 : i64, scratch_operands = 0 : i64, tpu.core_type = #tpu.core_type<tc>, window_params = [{transform_indices = @transform_0, window_bounds = array<i64: 2, 8, 128>}, {transform_indices = @transform_1, window_bounds = array<i64: 2, 8, 128>}, {transform_indices = @transform_2, window_bounds = array<i64: 2, 128>}]} {
    %c0 = arith.constant 0 : index
    %c0_0 = arith.constant 0 : index
    %c0_1 = arith.constant 0 : index
    %0 = vector.load %arg1[%c0, %c0_0, %c0_1] : memref<2x8x128xf32, #tpu.memory_space<vmem>>, vector<2x8x128xf32>
    %c0_2 = arith.constant 0 : index
    %c0_3 = arith.constant 0 : index
    %c0_4 = arith.constant 0 : index
    %1 = vector.load %arg2[%c0_2, %c0_3, %c0_4] : memref<2x8x128xf32, #tpu.memory_space<vmem>>, vector<2x8x128xf32>
    %2 = arith.mulf %0, %1 : vector<2x8x128xf32>
    %cst = arith.constant dense<0.000000e+00> : vector<2x128xf32>
    %3 = vector.multi_reduction <add>, %2, %cst [1] : vector<2x8x128xf32> to vector<2x128xf32>
    %cst_5 = arith.constant dense<0.000000e+00> : vector<2xf32>
    %4 = vector.multi_reduction <add>, %3, %cst_5 [1] : vector<2x128xf32> to vector<2xf32>
    %5 = vector.shape_cast %4 : vector<2xf32> to vector<2x1xf32>
    %cst_6 = arith.constant dense<0.000000e+00> : vector<2x128xf32>
    %6 = vector.multi_reduction <add>, %0, %cst_6 [1] : vector<2x8x128xf32> to vector<2x128xf32>
    %cst_7 = arith.constant dense<0.000000e+00> : vector<2xf32>
    %7 = vector.multi_reduction <add>, %6, %cst_7 [1] : vector<2x128xf32> to vector<2xf32>
    %8 = vector.shape_cast %7 : vector<2xf32> to vector<2x1xf32>
    %cst_8 = arith.constant dense<0.000000e+00> : vector<2x128xf32>
    %9 = vector.multi_reduction <add>, %1, %cst_8 [1] : vector<2x8x128xf32> to vector<2x128xf32>
    %cst_9 = arith.constant dense<0.000000e+00> : vector<2xf32>
    %10 = vector.multi_reduction <add>, %9, %cst_9 [1] : vector<2x128xf32> to vector<2xf32>
    %11 = vector.shape_cast %10 : vector<2xf32> to vector<2x1xf32>
    %12 = arith.addf %8, %11 : vector<2x1xf32>
    %13 = arith.subf %12, %5 : vector<2x1xf32>
    %14 = arith.divf %5, %13 : vector<2x1xf32>
    %cst_10 = arith.constant 1.000000e+00 : f32
    %15 = vector.broadcast %cst_10 : f32 to vector<2x1xf32>
    %16 = arith.subf %15, %14 : vector<2x1xf32>
    %17 = vector.shape_cast %16 : vector<2x1xf32> to vector<2x1xf32>
    %18 = vector.broadcast %17 : vector<2x1xf32> to vector<2x128xf32>
    %c0_11 = arith.constant 0 : index
    %c0_12 = arith.constant 0 : index
    %19 = vector.load %arg3[%c0_11, %c0_12] : memref<2x128xf32, #tpu.memory_space<vmem>>, vector<2x128xf32>
    tpu.vector_store %arg3[%c0_11, %c0_12], %18 {strides = array<i32>} : memref<2x128xf32, #tpu.memory_space<vmem>>, vector<2x128xf32>,
    return
  }
  func.func @transform_0(%arg0: i32) -> (i32, i32, i32) {
    %c0_i32 = arith.constant 0 : i32
    %c0_i32_0 = arith.constant 0 : i32
    %c0_i32_1 = arith.constant 0 : i32
    return %arg0, %c0_i32, %c0_i32_0 : i32, i32, i32
  }
  func.func @transform_1(%arg0: i32) -> (i32, i32, i32) {
    %c0_i32 = arith.constant 0 : i32
    %c0_i32_0 = arith.constant 0 : i32
    %c0_i32_1 = arith.constant 0 : i32
    return %arg0, %c0_i32, %c0_i32_0 : i32, i32, i32
  }
  func.func @transform_2(%arg0: i32) -> (i32, i32) {
    %c0_i32 = arith.constant 0 : i32
    %c0_i32_0 = arith.constant 0 : i32
    return %arg0, %c0_i32 : i32, i32
  }
}

</mosaic_0001>

<bundles_post_ra>
// kernel: iou_loss.1
= control target key start
LH: loop header
LB: loop body
LE: loop exit
PB: predicated region body
PF: predicated region fallthrough
CT: control target
= control target key end

     0   :  { %vm31_vm0 = vcmask 1041409   ;;  %vm34_vm1 = vcmask 1041408   ;;  %s124_s0 = inlined_call_operand.vmem [shape: f32[2,8,128], index: 0, kind: input, shape index: {}]   ;;  %s125_s1 = inlined_call_operand.vmem [shape: f32[2,8,128], index: 1, kind: input, shape index: {}]   ;;  %s126_s2 = inlined_call_operand.vmem [shape: f32[2,128], index: 2, kind: output, shape index: {}]  }
   0x1   :  { %v11_v0 = vld [vmem:[%s124_s0] sm:$0xff]  ;;  %v12_v1 = vld [vmem:[%s124_s0 + $0x8] sm:$0xff] }
   0x2   :  { %v13_v2 = vld [vmem:[%s125_s1] sm:$0xff]  ;;  %v38_v3 = vrot.slane %v11_v0, 4  ;;  %v44_v4 = vrot.slane %v12_v1, 4  ;;  %v14_v5 = vld [vmem:[%s125_s1 + $0x8] sm:$0xff] }
   0x3   :  { %v57_v6 = vrot.slane %v13_v2, 4  ;;  %v15_v7 = vmul.f32 %v13_v2, %v11_v0  ;;  %v63_v8 = vrot.slane %v14_v5, 4  ;;  %v16_v9 = vmul.f32 %v14_v5, %v12_v1 }
   0x4   :  { %v39_v10 = vadd.f32 %v38_v3, %v11_v0  ;;  %v45_v11 = vadd.f32 %v44_v4, %v12_v1 }
   0x5   :  { %v58_v12 = vadd.f32 %v57_v6, %v13_v2  ;;  %v17_v13 = vrot.slane %v15_v7, 4  ;;  %v64_v14 = vadd.f32 %v63_v8, %v14_v5  ;;  %v23_v15 = vrot.slane %v16_v9, 4 }
   0x6   :  { %v40_v16 = vrot.slane %v39_v10, 2  ;;  %v46_v17 = vrot.slane %v45_v11, 2 }
   0x7   :  { %v59_v18 = vrot.slane %v58_v12, 2  ;;  %v18_v19 = vadd.f32 %v17_v13, %v15_v7  ;;  %v65_v20 = vrot.slane %v64_v14, 2  ;;  %v24_v21 = vadd.f32 %v23_v15, %v16_v9 }
   0x8   :  { %v41_v22 = vadd.f32 %v40_v16, %v39_v10  ;;  %v47_v23 = vadd.f32 %v46_v17, %v45_v11 }
   0x9   :  { %v60_v24 = vadd.f32 %v59_v18, %v58_v12  ;;  %v19_v25 = vrot.slane %v18_v19, 2  ;;  %v66_v26 = vadd.f32 %v65_v20, %v64_v14  ;;  %v25_v27 = vrot.slane %v24_v21, 2 }
   0xa   :  { %v42_v28 = vrot.slane %v41_v22, 1  ;;  %v48_v29 = vrot.slane %v47_v23, 1 }
   0xb   :  { %v61_v30 = vrot.slane %v60_v24, 1  ;;  %v20_v31 = vadd.f32 %v19_v25, %v18_v19  ;;  %v67_v32 = vrot.slane %v66_v26, 1  ;;  %v26_v33 = vadd.f32 %v25_v27, %v24_v21 }
   0xc   :  { %v43_v34 = vadd.f32 %v42_v28, %v41_v22  ;;  %v49_v35 = vadd.f32 %v48_v29, %v47_v23 }
   0xd   :  { %v62_v36 = vadd.f32 %v61_v30, %v60_v24  ;;  %v21_v37 = vrot.slane %v20_v31, 1  ;;  %v68_v38 = vadd.f32 %v67_v32, %v66_v26  ;;  %v27_v39 = vrot.slane %v26_v33, 1 }
   0xe   :  { %v52_v40 = vsel %vm31_vm0, %v49_v35, %v43_v34 }
   0xf   :  { %v22_v41 = vadd.f32 %v21_v37, %v20_v31  ;;  %v54_v42 = vsel %vm34_vm1, %v52_v40, 0.0  ;;  %v71_v43 = vsel %vm31_vm0, %v68_v38, %v62_v36  ;;  %v28_v44 = vadd.f32 %v27_v39, %v26_v33 }
  0x10   :  { %55 = vadd.xlane.f32.xlu0 %v54_v42  ;;  %v73_v45 = vsel %vm34_vm1, %v71_v43, 0.0 }
  0x11   :  { %v32_v46 = vsel %vm31_vm0, %v28_v44, %v22_v41 }
  0x12   :  { %v35_v47 = vsel %vm34_vm1, %v32_v46, 0.0 }
  0x13   :  { %36 = vadd.xlane.f32.xlu1 %v35_v47 }
  0x14   :  { %74 = vadd.xlane.f32.xlu0 %v73_v45 }
  0x9d   :  { %v56_v48 = vpop.xlane.xlu0 %55 }
  0xa0   :  { %v37_v50 = vpop.xlane.xlu1 %36 }
  0xa1   :  { %v75_v49 = vpop.xlane.xlu0 %74 }
  0xa2   :  { %v76_v51 = vadd.f32 %v75_v49, %v56_v48 }
  0xa4   :  { %v77_v52 = vsub.f32 %v76_v51, %v37_v50 }
  0xa6   :  { %86 = vrcp.f32 %v77_v52 }
  0xb0   :  { %v87_v53 = vpop.eup %86 }
  0xb1   :  { %v79_v54 = vmul.f32 %v87_v53, %v37_v50 }
  0xb3   :  { %v80_v55 = vsub.f32 1.0, %v79_v54 }
  0xb5   :  { %81 = vst [vmem:[%s126_s2] sm:$0x3] %v80_v55 }

</bundles_post_ra>
